<compile_context>
chip_gen: v7x
topology: tpu7x:2x2x1
jax: 0.10.0
libtpu: 0.0.40
codegen_flags: <defaults>
</compile_context>

<pallas_src>
import functools

import jax
import jax.numpy as jnp
from jax.experimental import pallas as pl
from jax.experimental.pallas import tpu as pltpu

# ---- quantizer config (Quantizer(N_bits=8, type='per_tensor',
#                                  signed=True, symmetric=True)) -------------
N_BITS = 8
QP = float(2 ** (N_BITS - 1) - 1)          # 127.0
MIN_RANGE = 1e-6

_MiB = 1024 * 1024
_TARGET_TILE_BYTES = 2 * _MiB              # streamed tile ~2 MiB (85% roofline)


# ---------------------------------------------------------------- hw config -
def _vmem_capacity_bytes():
    try:
        info = pltpu.get_tpu_info()
        cap = getattr(info, "vmem_capacity_bytes", None)
        if cap:
            return int(cap)
    except Exception:
        pass
    return 64 * _MiB                        # conservative default (v7x per-TC)


def _generation_config():
    cap = _vmem_capacity_bytes()
    if cap <= 80 * _MiB:
        # v7x-class: 64 MiB VMEM / TC and per-TC HBM bandwidth -> prefer the
        # streamed (both-TensorCore) path except for tiny launch-bound slabs.
        return dict(vmem_limit=48 * _MiB, fused_limit=2 * _MiB, shards=2)
    # v5e / v6e: 128 MiB VMEM, single TC -> keep mid-size tensors on the
    # fused 2N-traffic path.
    return dict(vmem_limit=72 * _MiB, fused_limit=28 * _MiB, shards=1)


def _make_cast(out_dtype):
    if jnp.issubdtype(jnp.dtype(out_dtype), jnp.integer):
        return lambda q: jnp.clip(q, -QP, QP).astype(out_dtype)
    return lambda q: q.astype(out_dtype)


# ------------- fused path: abs-max + quantize in one VMEM-resident pass -----
def _fused_kernel(x_ref, q_ref, s_ref, *, cast):
    x = x_ref[...]
    max_x = jnp.maximum(jnp.max(jnp.abs(x)), MIN_RANGE)
    inv = QP / max_x                         # one reciprocal, then VALU muls
    q_ref[...] = cast(jnp.round(x * inv))
    s_ref[...] = jnp.full((1, 1), max_x / QP, dtype=jnp.float32)


# ------------- streamed pass 1: per-shard partial abs-max -------------------
def _scale_kernel(x_ref, pmax_out_ref, pmax_acc,
                  *, steps, row_tile, rows, needs_mask):
    c = pl.program_id(0)                     # shard (core-parallel) axis
    i = pl.program_id(1)                     # reduction axis

    @pl.when(i == 0)
    def _():
        pmax_acc[...] = jnp.zeros_like(pmax_acc)

    ax = jnp.abs(x_ref[...])
    if needs_mask:
        # Mask rows whose *intended* global index is past the end (covers the
        # partial last tile and any excess tiles of the shard split).
        base = (c * steps + i) * row_tile
        rid = jax.lax.broadcasted_iota(jnp.int32, ax.shape, 0) + base
        ax = jnp.where(rid < rows, ax, 0.0)

    # (row_tile, lane) -> (1, lane): sublane reduce per tile; the store of the
    # shard's partial happens only once, on the last grid step.
    pmax_acc[...] = jnp.maximum(pmax_acc[...],
                                jnp.max(ax, axis=0, keepdims=True))

    @pl.when(i == pl.num_programs(1) - 1)
    def _():
        pmax_out_ref[...] = jnp.broadcast_to(pmax_acc[...], pmax_out_ref.shape)


# ------------- streamed pass 2: elementwise quantize ------------------------
def _quant_kernel(x_ref, inv_ref, q_ref, *, cast):
    q_ref[...] = cast(jnp.round(x_ref[...] * inv_ref[0, 0]))


# ---------------------------------------------------------------- wrapper ---
def _pick_row_tile(rows, lane, requested):
    if requested is None:
        requested = max(1, _TARGET_TILE_BYTES // (lane * 4))
    rt = min(int(requested), rows)
    if rt >= 8:
        rt = (rt // 8) * 8
    elif rt != rows:
        rt = rows if rows < 8 else 8
    return max(rt, 1)


def quant_act(x, *, out_dtype=jnp.float32, fused_limit_bytes=None,
              row_tile=None, shards=None):
    """Pallas implementation of QuantAct(N_bits=8, type='per_tensor').forward.

    Returns (q_x, scale): q_x.shape == x.shape (out_dtype, default float32),
    scale is a scalar float32.
    """
    cfg = _generation_config()
    if fused_limit_bytes is None:
        fused_limit_bytes = cfg["fused_limit"]
    if shards is None:
        shards = cfg["shards"]
    vmem_limit = cfg["vmem_limit"]
    cast = _make_cast(out_dtype)
    out_itemsize = jnp.dtype(out_dtype).itemsize

    orig_shape = x.shape
    xf = jnp.asarray(x, jnp.float32).reshape(-1)
    n = xf.size

    # ---- lane-dense re-layout; prefer a lane width that divides n so that
    # ---- no pad copy (in) and no slice copy (out) are needed. --------------
    lane = None
    for cand in (512, 256, 128):
        if n % cand == 0:
            lane = cand
            break
    needs_pad = lane is None
    if needs_pad:
        # TODO(synk): mask the ragged tail in-kernel instead of padding; this
        # rare fallback pays one pad copy + one output-slice copy.
        lane = 512
        padded = pl.cdiv(n, lane) * lane
        xf = jnp.pad(xf, (0, padded - n))
    rows = xf.size // lane
    x2d = xf.reshape(rows, lane)

    in_bytes = rows * lane * 4
    out_bytes = rows * lane * out_itemsize
    fused = (in_bytes <= fused_limit_bytes
             and in_bytes + out_bytes + 4 * _MiB <= vmem_limit)

    if fused:
        # Single invocation, whole slab resident in VMEM: 1 read + 1 write.
        q2d, scale = pl.pallas_call(
            functools.partial(_fused_kernel, cast=cast),
            out_shape=(jax.ShapeDtypeStruct((rows, lane), out_dtype),
                       jax.ShapeDtypeStruct((1, 1), jnp.float32)),
            in_specs=[pl.BlockSpec(memory_space=pltpu.MemorySpace.VMEM)],
            out_specs=(pl.BlockSpec(memory_space=pltpu.MemorySpace.VMEM),
                       pl.BlockSpec(memory_space=pltpu.MemorySpace.VMEM)),
            compiler_params=pltpu.CompilerParams(vmem_limit_bytes=vmem_limit),
            cost_estimate=pl.CostEstimate(flops=3 * rows * lane,
                                          transcendentals=0,
                                          bytes_accessed=in_bytes + out_bytes + 4),
        )(x2d)
        scale = scale.reshape(())
    else:
        rt = _pick_row_tile(rows, lane, row_tile)
        nblocks = pl.cdiv(rows, rt)
        nshards = max(1, min(int(shards), nblocks))
        steps = pl.cdiv(nblocks, nshards)
        needs_clamp = nshards * steps > nblocks
        needs_mask = nshards * steps * rt != rows

        if needs_clamp:
            in_map = lambda c, i: (jnp.minimum(c * steps + i, nblocks - 1), 0)
        else:
            in_map = lambda c, i: (c * steps + i, 0)

        # --- pass 1: per-shard partial abs-max (shard axis "parallel",
        # --- reduction axis "arbitrary" last). ------------------------------
        partials = pl.pallas_call(
            functools.partial(_scale_kernel, steps=steps, row_tile=rt,
                              rows=rows, needs_mask=needs_mask),
            out_shape=jax.ShapeDtypeStruct((nshards * 8, lane), jnp.float32),
            grid=(nshards, steps),
            in_specs=[pl.BlockSpec((rt, lane), in_map)],
            out_specs=pl.BlockSpec((8, lane), lambda c, i: (c, 0)),
            scratch_shapes=[pltpu.VMEM((1, lane), jnp.float32)],
            compiler_params=pltpu.CompilerParams(
                dimension_semantics=("parallel", "arbitrary"),
                vmem_limit_bytes=32 * _MiB),
            cost_estimate=pl.CostEstimate(flops=2 * rows * lane,
                                          transcendentals=0,
                                          bytes_accessed=in_bytes),
        )(x2d)

        # Tiny combine: clamp + scale + reciprocal (negligible scalar XLA ops).
        max_x = jnp.maximum(jnp.max(partials), MIN_RANGE)
        scale = max_x / QP
        inv_arr = (QP / max_x).reshape(1, 1).astype(jnp.float32)

        # --- pass 2: elementwise quantize (independent tiles, "parallel";
        # --- reciprocal constant read from SMEM). ---------------------------
        q2d = pl.pallas_call(
            functools.partial(_quant_kernel, cast=cast),
            out_shape=jax.ShapeDtypeStruct((rows, lane), out_dtype),
            grid=(nblocks,),
            in_specs=[pl.BlockSpec((rt, lane), lambda i: (i, 0)),
                      pl.BlockSpec(memory_space=pltpu.MemorySpace.SMEM)],
            out_specs=pl.BlockSpec((rt, lane), lambda i: (i, 0)),
            compiler_params=pltpu.CompilerParams(
                dimension_semantics=("parallel",),
                vmem_limit_bytes=32 * _MiB),
            cost_estimate=pl.CostEstimate(flops=2 * rows * lane,
                                          transcendentals=0,
                                          bytes_accessed=in_bytes + out_bytes),
        )(x2d, inv_arr)

    if needs_pad:
        q_x = q2d.reshape(-1)[:n].reshape(orig_shape)
    else:
        q_x = q2d.reshape(orig_shape)
    return q_x, scale


if __name__ == "__main__":
    key = jax.random.PRNGKey(0)
    k1, k2 = jax.random.split(key)

    def reference(x):
        m = jnp.maximum(jnp.max(jnp.abs(x)), MIN_RANGE)
        s = m / QP
        return jnp.round(x / s), s

    # NCHW activation, small shape.
    x = jax.random.normal(k1, (2, 4, 16, 16), dtype=jnp.float32)
    q_want, s_want = reference(x)

    # 1) Fused (VMEM-resident) path — the one small activations take.
    q1, s1 = quant_act(x)
    jax.block_until_ready((q1, s1))
    assert q1.shape == x.shape and q1.dtype == jnp.float32
    assert jnp.allclose(s1, s_want, rtol=1e-6, atol=1e-12), "scale mismatch (fused)"
    assert float(jnp.max(jnp.abs(q1 - q_want))) <= 1.0, "q mismatch (fused)"

    # 2) Streamed two-pass path, forced (single-shard pass 1).
    q2, s2 = quant_act(x, fused_limit_bytes=0)
    jax.block_until_ready((q2, s2))
    assert q2.shape == x.shape
    assert jnp.allclose(s2, s_want, rtol=1e-6, atol=1e-12), "scale mismatch (streamed)"
    assert float(jnp.max(jnp.abs(q2 - q_want))) <= 1.0, "q mismatch (streamed)"

    # 3) Streamed path with 2-shard pass 1, ragged row tiles and index clamp.
    x2 = jax.random.normal(k2, (2, 4, 20, 64), dtype=jnp.float32)
    q_want2, s_want2 = reference(x2)
    q3, s3 = quant_act(x2, fused_limit_bytes=0, shards=2, row_tile=8)
    jax.block_until_ready((q3, s3))
    assert q3.shape == x2.shape
    assert jnp.allclose(s3, s_want2, rtol=1e-6, atol=1e-12), "scale mismatch (sharded)"
    assert float(jnp.max(jnp.abs(q3 - q_want2))) <= 1.0, "q mismatch (sharded)"

    print("KERNEL_OK")
</pallas_src>

<mosaic_0001>
module attributes {stable_mosaic.version = 11 : i64} {
  func.func @_fused_kernel(%arg0: memref<4x512xf32, #tpu.memory_space<vmem>>, %arg1: memref<4x512xf32, #tpu.memory_space<vmem>>, %arg2: memref<1x1xf32, #tpu.memory_space<vmem>>) attributes {dimension_semantics = [], scalar_prefetch = 0 : i64, scratch_operands = 0 : i64, tpu.core_type = #tpu.core_type<tc>} {
    %c0 = arith.constant 0 : index
    %c0_0 = arith.constant 0 : index
    %0 = vector.load %arg0[%c0, %c0_0] : memref<4x512xf32, #tpu.memory_space<vmem>>, vector<4x512xf32>
    %1 = math.absf %0 : vector<4x512xf32>
    %2 = vector.shape_cast %1 : vector<4x512xf32> to vector<1x4x512xf32>
    %cst = arith.constant dense<0xFF800000> : vector<1xf32>
    %3 = vector.multi_reduction <maximumf>, %2, %cst [1, 2] : vector<1x4x512xf32> to vector<1xf32>
    %4 = vector.shape_cast %3 : vector<1xf32> to vector<1x1x1xf32>
    %5 = vector.extract %4[0, 0, 0] : f32 from vector<1x1x1xf32>
    %cst_1 = arith.constant 9.99999997E-7 : f32
    %6 = arith.maximumf %5, %cst_1 : f32
    %cst_2 = arith.constant 1.270000e+02 : f32
    %7 = arith.divf %cst_2, %6 : f32
    %8 = vector.broadcast %7 : f32 to vector<4x512xf32>
    %9 = arith.mulf %0, %8 : vector<4x512xf32>
    %10 = math.roundeven %9 : vector<4x512xf32>
    %c0_3 = arith.constant 0 : index
    %c0_4 = arith.constant 0 : index
    %11 = vector.load %arg1[%c0_3, %c0_4] : memref<4x512xf32, #tpu.memory_space<vmem>>, vector<4x512xf32>
    tpu.vector_store %arg1[%c0_3, %c0_4], %10 {strides = array<i32>} : memref<4x512xf32, #tpu.memory_space<vmem>>, vector<4x512xf32>,
    %cst_5 = arith.constant 1.270000e+02 : f32
    %12 = arith.divf %6, %cst_5 : f32
    %13 = vector.broadcast %12 : f32 to vector<1x1xf32>
    %c0_6 = arith.constant 0 : index
    %c0_7 = arith.constant 0 : index
    %14 = vector.load %arg2[%c0_6, %c0_7] : memref<1x1xf32, #tpu.memory_space<vmem>>, vector<1x1xf32>
    tpu.vector_store %arg2[%c0_6, %c0_7], %13 {strides = array<i32>} : memref<1x1xf32, #tpu.memory_space<vmem>>, vector<1x1xf32>,
    return
  }
}

</mosaic_0001>

<bundles_post_ra>
// kernel: tpu_custom_call.1
= control target key start
LH: loop header
LB: loop body
LE: loop exit
PB: predicated region body
PF: predicated region fallthrough
CT: control target
= control target key end

     0   :  { %8 = vsyncpa [#allocation3], 0  ;;  %s237_s0 = inlined_call_operand.hbm [shape: f32[4,512], index: 0, kind: input, shape index: {}]   ;;  %s238_s1 = inlined_call_operand.hbm [shape: f32[4,512], index: 1, kind: output, shape index: {0}]   ;;  %s239_s2 = inlined_call_operand.hbm [shape: f32[1,1], index: 2, kind: output, shape index: {1}]  }
   0x1   :  { %9 = vsyncpa [#allocation4], 0 }
   0x2   :  { %10 = vsyncpa [#allocation7], 0  ;;  %s182_s9 = smov [#allocation2]   ;;  %s110_s13 = scalar_lea.hbm %s237_s0, 256 }
   0x3   :  { %s17_s10 = sshll.u32 %s182_s9, 4  ;;  %p111_p0 = scmp.ne.s32.totalorder %s237_s0, %s110_s13  ;;  %s18_s10 = int_to_ptr.vmem [resolvable:$true] %s17_s10 }
   0x4   :  { %p114_p1 = scmp.lt.u32.totalorder %s110_s13, %s237_s0 }
   0x6   :  { %p116_p2 = pnand %p114_p1, %p111_p0 }
   0x8   :  { %119 = shalt.err (!%p116_p2)
}
   0x9   :  { %s120_s18 = scalar_lea.vmem %s18_s10, 256  ;;  %p125_p4 = scmp.lt.s32.totalorder %s18_s10, %s18_s10 }
   0xa   :  { %p121_p3 = scmp.ne.s32.totalorder %s18_s10, %s120_s18  ;;  %p126_p5 = scmp.lt.s32.totalorder %s120_s18, %s120_s18 }
   0xc   :  { %p127_p6 = por %p126_p5, %p125_p4 }
   0xe   :  { %p128_p7 = pnand %p127_p6, %p121_p3 }
  0x10   :  { %131 = shalt.err (!%p128_p7)
}
  0x11   :  { %20 = dma.hbm_to_vmem [thread:$0]  %s237_s0, 256, %s18_s10, [#allocation3]  }
  0x12   :  { %176 = dma.done.wait [#allocation3], 256  }
  0x13   :  { %177 = vsyncadd [#allocation3], 4294967040  ;;  %v24_v0 = vld [vmem:[#allocation2] sm:$0xff]  ;;  %v25_v1 = vld [vmem:[#allocation2 + $0x8] sm:$0xff]  ;;  %vm34_vm0 = vcmask 1043456   ;;  %s183_s21 = smov [#allocation6]  }
  0x14   :  { %v26_v2 = vand.u32 2147483647, %v24_v0  ;;  %v27_v3 = vand.u32 2147483647, %v25_v1  ;;  %s85_s22 = sshll.u32 %s183_s21, 4  ;;  %vm67_vm1 = vcmask 0   ;;  %s86_s22 = int_to_ptr.vmem [resolvable:$true] %s85_s22 }
  0x15   :  { %s184_s23 = smov 1e-06   ;;  %s132_s26 = scalar_lea.vmem %s86_s22, 16 }
  0x16   :  { %v30_v4 = vcombine.high %v26_v2, %v26_v2  ;;  %v31_v5 = vcombine.high %v27_v3, %v27_v3  ;;  %v35_v6 = vsel %vm34_vm0, %v26_v2, -inf  ;;  %v37_v7 = vsel %vm34_vm0, %v27_v3, -inf  ;;  %p133_p8 = scmp.ne.s32.totalorder %s86_s22, %s132_s26  ;;  %s136_s27 = scalar_lea.vmem %s86_s22, 32 }
  0x17   :  { %p137_p9 = scmp.lt.s32.totalorder %s86_s22, %s86_s22  ;;  %p138_p10 = scmp.lt.s32.totalorder %s136_s27, %s132_s26 }
  0x18   :  { %v36_v8 = vsel %vm34_vm0, %v30_v4, -inf  ;;  %v38_v9 = vsel %vm34_vm0, %v31_v5, -inf }
  0x19   :  { %v39_v10 = vmax.f32 %v35_v6, %v36_v8  ;;  %v40_v11 = vmax.f32 %v37_v7, %v38_v9  ;;  %p139_p11 = por %p138_p10, %p137_p9 }
  0x1b   :  { %v41_v12 = vmax.f32 %v39_v10, %v40_v11  ;;  %p140_p12 = pnand %p139_p11, %p133_p8 }
  0x1d   :  { %42 = vmax.xlane.f32.xlu0 %v41_v12 }
  0xaa   :  { %v43_v13 = vpop.xlane.xlu0 %42 }
  0xab   :  { %v44_v14 = vrot.slane %v43_v13, 4 }
  0xad   :  { %v45_v15 = vmax.f32 %v43_v13, %v44_v14 }
  0xaf   :  { %v46_v16 = vrot.slane %v45_v15, 2 }
  0xb1   :  { %v47_v17 = vmax.f32 %v45_v15, %v46_v16 }
  0xb3   :  { %v48_v18 = vrot.slane %v47_v17, 1 }
  0xb5   :  { %v49_v19 = vmax.f32 %v47_v17, %v48_v18 }
  0xb7   :  { %98 = vpush %v49_v19 }
  0xe8   :  { %s99_s0 = spop %98 }
  0xe9   :  { %s51_s24 = smax.f32 %s184_s23, %s99_s0 }
  0xea   :  { %v52_v20 = vstv %s51_s24  ;;  %s65_s25 = smul.f32 0.007874016, %s51_s24 }
  0xeb   :  { %108 = vrcp.f32 %v52_v20 }
  0xec   :  { %v66_v21 = vstv %s65_s25 }
  0xed   :  { %68 = vst.msk [vmem:[#allocation6] sm:$0x1] %vm67_vm1, %v66_v21 }
  0xee   :  { %143 = shalt.err (!%p140_p12)
}
  0xef   :  { %s144_s30 = scalar_lea.hbm %s239_s2, 16 }
  0xf0   :  { %p145_p13 = scmp.ne.s32.totalorder %s239_s2, %s144_s30  ;;  %p148_p0 = scmp.lt.u32.totalorder %s144_s30, %s239_s2 }
  0xf2   :  { %p150_p1 = pnand %p148_p0, %p145_p13 }
  0xf4   :  { %153 = shalt.err (!%p150_p1)
}
  0xf5   :  { %88 = dma.vmem_to_hbm [thread:$0]  %s86_s22, 16, %s239_s2, [#allocation7]   ;;  %v109_v22 = vpop.eup %108 }
  0xf6   :  { %100 = vpush %v109_v22  ;;  %s185_s11 = smov [#allocation5]  }
  0xf7   :  { %s75_s12 = sshll.u32 %s185_s11, 4  ;;  %s76_s12 = int_to_ptr.vmem [resolvable:$true] %s75_s12 }
  0xf8   :  { %s154_s13 = scalar_lea.vmem %s76_s12, 256  ;;  %p159_p3 = scmp.lt.s32.totalorder %s76_s12, %s76_s12 }
  0xf9   :  { %p155_p2 = scmp.ne.s32.totalorder %s76_s12, %s154_s13  ;;  %p160_p4 = scmp.lt.s32.totalorder %s154_s13, %s154_s13 }
  0xfb   :  { %p161_p5 = por %p160_p4, %p159_p3 }
  0xfd   :  { %p162_p6 = pnand %p161_p5, %p155_p2 }
 0x127   :  { %s101_s9 = spop %100 }
 0x128   :  { %s55_s10 = smul.f32 127.0, %s101_s9 }
 0x12a   :  { %v56_v23 = vstv %s55_s10 }
 0x12b   :  { %v57_v24 = vmul.f32 %v56_v23, %v24_v0  ;;  %v58_v25 = vmul.f32 %v56_v23, %v25_v1 }
 0x12d   :  { %v102_v26 = vround.rtne.f32 %v57_v24  ;;  %v103_v27 = vround.rtne.f32 %v58_v25 }
 0x12f   :  { %61 = vst [vmem:[#allocation5] sm:$0xff] %v102_v26  ;;  %62 = vst [vmem:[#allocation5 + $0x8] sm:$0xff] %v103_v27 }
 0x130   :  { %165 = shalt.err (!%p162_p6)
}
 0x131   :  { %s166_s15 = scalar_lea.hbm %s238_s1, 256 }
 0x132   :  { %p167_p7 = scmp.ne.s32.totalorder %s238_s1, %s166_s15  ;;  %p170_p8 = scmp.lt.u32.totalorder %s166_s15, %s238_s1 }
 0x134   :  { %p172_p9 = pnand %p170_p8, %p167_p7 }
 0x136   :  { %175 = shalt.err (!%p172_p9)
}
 0x137   :  { %78 = dma.vmem_to_hbm [thread:$0]  %s76_s12, 256, %s238_s1, [#allocation4]  }
 0x138   :  { %178 = dma.done.wait [#allocation4], 256  }
 0x139   :  { %179 = vsyncadd [#allocation4], 4294967040 }
 0x13a   :  { %180 = dma.done.wait [#allocation7], 16  }
 0x13b   :  { %181 = vsyncadd [#allocation7], 4294967280 }
 0x13c   :  { %95 = vsyncpa [#allocation3], 1 }
 0x13d   :  { %96 = vsyncpa [#allocation4], 1 }
 0x13e   :  { %97 = vsyncpa [#allocation7], 1 }

</bundles_post_ra>
